<compile_context>
chip_gen: v5e
topology: v5e:2x2
jax: 0.10.0
libtpu: 0.0.40
codegen_flags: <defaults>
</compile_context>

<pallas_src>
import functools
import math

import jax
import jax.numpy as jnp
from jax import lax
from jax.experimental import pallas as pl
from jax.experimental.pallas import tpu as pltpu


def classifier_kernel(x_ref, w1_ref, b1_ref, w2_ref, b2_ref, o_ref, acc_ref,
                      *, inv_l, l_total, tl):
    # x_ref : (tl, tb, E) slab of the latent-first input
    # w1_ref: (E, E)    b1_ref: (1, E)
    # w2_ref: (E, Cp)   b2_ref: (1, Cp)   (Cp = n_classes padded to 128 lanes)
    # o_ref : (tb, Cp)  acc_ref: (tb, E) f32 running sum over L
    l_step = pl.program_id(1)

    @pl.when(l_step == 0)
    def _init():
        acc_ref[...] = jnp.zeros_like(acc_ref)

    x = x_ref[...]
    if l_total % tl != 0:
        # cdiv grid: mask out-of-range rows of the ragged final L slab
        # (mandatory for a reduction — OOB block contents are garbage).
        rem = l_total - l_step * tl
        row = lax.broadcasted_iota(jnp.int32, x.shape, 0)
        x = jnp.where(row < rem, x, jnp.zeros_like(x))

    # Running sum over the latent axis; dtype=f32 keeps any up-convert fused
    # into the add-tree instead of materializing an f32 copy of the slab.
    acc_ref[...] += jnp.sum(x, axis=0, dtype=jnp.float32)

    @pl.when(l_step == pl.num_programs(1) - 1)
    def _finalize():
        m = acc_ref[...] * inv_l                                          # mean over dim 0
        h = jnp.dot(m, w1_ref[...],
                    preferred_element_type=jnp.float32) + b1_ref[...]     # fc1
        out = jnp.dot(h, w2_ref[...],
                      preferred_element_type=jnp.float32) + b2_ref[...]   # fc2
        o_ref[...] = out.astype(o_ref.dtype)


def classifier_forward(x, w1_t, b1, w2_t, b2, *, tl=None):
    """Perceiver-IO classifier head.

    x: (L, B, E); w1_t: (E, E) [in,out]; b1: (E,); w2_t: (E, C) [in,out]; b2: (C,).
    Returns (B, C), equal (within fp32 tolerance) to fc2(fc1(x).mean(dim=0)).
    """
    L, B, E = x.shape
    C = w2_t.shape[1]
    itm = x.dtype.itemsize

    # Lane-dense output: pad the class dim to a multiple of 128 so the final
    # store is an unmasked vst; slice back to C outside the kernel.  Under jit
    # with static weights this padding constant-folds / fuses away.
    cp = 128 * max(1, math.ceil(C / 128))
    w2_p = jnp.zeros((E, cp), w2_t.dtype).at[:, :C].set(w2_t)
    b2_p = jnp.zeros((1, cp), b2.dtype).at[0, :C].set(b2)
    b1_2d = b1.reshape(1, E)

    # ---- batch tiling: split B into two "parallel" blocks when it is large
    #      enough (>=8 rows per block) so v7x's two TensorCores can each
    #      stream half of x; a no-op (single block) otherwise. --------------
    tb = B // 2 if (B % 2 == 0 and (B // 2) % 8 == 0) else B
    grid_b = B // tb

    # ---- latent tiling: size the double-buffered x slab from this
    #      generation's VMEM capacity instead of a hard-coded tile. ---------
    try:
        vmem_cap = int(pltpu.get_tpu_info().vmem_capacity_bytes)
    except Exception:  # pragma: no cover - conservative fallback (v7x per-TC)
        vmem_cap = 64 << 20
    vmem_budget = int(vmem_cap * 0.75)   # ~48 MiB on v7x, ~96 MiB on v5e/v6e

    # Bytes resident independent of tl (pipeline double-buffers every block).
    # TODO(synk): single-buffer the constant weight blocks via
    # pipeline_mode=pl.Buffered(1) once needed; for now budget the extra copy.
    fixed_bytes = (
        2 * (E * E + E) * w1_t.dtype.itemsize      # w1 + b1
        + 2 * (E * cp + cp) * w2_t.dtype.itemsize  # w2 + b2 (padded)
        + 2 * tb * cp * itm                        # output block
        + tb * E * 4                               # f32 accumulator scratch
    )
    if tl is None:
        x_budget = max(vmem_budget - fixed_bytes, 1 << 20)
        tl = x_budget // (2 * tb * E * itm)        # double-buffered x slab
        tl = int(min(max(tl, 1), L))
        if 8 <= tl < L:
            tl -= tl % 8                           # clean slab size; tail masked
    tl = int(min(max(tl, 1), L))
    grid_l = pl.cdiv(L, tl)                        # ragged tail handled in-kernel

    kernel = functools.partial(classifier_kernel, inv_l=1.0 / L, l_total=L, tl=tl)

    vmem_used = fixed_bytes + 2 * tl * tb * E * itm
    vmem_limit = int(min(max(vmem_used + (8 << 20), 16 << 20),
                         int(vmem_cap * 0.9)))

    cost = pl.CostEstimate(
        flops=2 * B * E * (E + cp) + L * B * E,
        transcendentals=0,
        bytes_accessed=(L * B * E * itm
                        + (E * E + E) * w1_t.dtype.itemsize
                        + (E * cp + cp) * w2_t.dtype.itemsize
                        + B * cp * itm),
    )

    out_padded = pl.pallas_call(
        kernel,
        out_shape=jax.ShapeDtypeStruct((B, cp), x.dtype),
        grid_spec=pltpu.PrefetchScalarGridSpec(
            num_scalar_prefetch=0,
            grid=(grid_b, grid_l),
            in_specs=[
                pl.BlockSpec((tl, tb, E), lambda b, l: (l, b, 0)),
                pl.BlockSpec((E, E), lambda b, l: (0, 0)),
                pl.BlockSpec((1, E), lambda b, l: (0, 0)),
                pl.BlockSpec((E, cp), lambda b, l: (0, 0)),
                pl.BlockSpec((1, cp), lambda b, l: (0, 0)),
            ],
            out_specs=pl.BlockSpec((tb, cp), lambda b, l: (b, 0)),
            scratch_shapes=[pltpu.VMEM((tb, E), jnp.float32)],
        ),
        compiler_params=pltpu.CompilerParams(
            # B-blocks are fully independent (accumulator init/finalize happens
            # per B-block) -> "parallel"; L is a pure reduction axis, kept last
            # and "arbitrary".
            dimension_semantics=("parallel", "arbitrary"),
            vmem_limit_bytes=vmem_limit,
        ),
        cost_estimate=cost,
    )(x, w1_t, b1_2d, w2_p, b2_p)

    return out_padded[:, :C]


if __name__ == "__main__":
    # Small shapes consistent with the module: latents L, batch B, embed E, classes C.
    L, B, E, C = 8, 2, 32, 10

    key = jax.random.PRNGKey(0)
    kx, kw1, kb1, kw2, kb2 = jax.random.split(key, 5)

    x = jax.random.normal(kx, (L, B, E), dtype=jnp.float32)

    # PyTorch Linear stores weight as [out, in]; the kernel takes [in, out].
    w1 = jax.random.normal(kw1, (E, E), dtype=jnp.float32) * 0.05   # fc1.weight
    b1 = jax.random.normal(kb1, (E,), dtype=jnp.float32) * 0.05     # fc1.bias
    w2 = jax.random.normal(kw2, (C, E), dtype=jnp.float32) * 0.05   # fc2.weight
    b2 = jax.random.normal(kb2, (C,), dtype=jnp.float32) * 0.05     # fc2.bias

    # tl=3 with L=8 -> 3 L-steps including a ragged tail, exercising the
    # accumulate / finalize / cdiv-tail-mask paths.
    clf = jax.jit(functools.partial(classifier_forward, tl=3))
    out = jax.block_until_ready(clf(x, w1.T, b1, w2.T, b2))

    # Pure-JAX reference matching the PyTorch forward exactly.
    ref_h = x @ w1.T + b1              # (L, B, E)
    ref_m = ref_h.mean(axis=0)         # (B, E)
    ref = ref_m @ w2.T + b2            # (B, C)
    assert out.shape == (B, C)
    assert jnp.allclose(out, ref, atol=1e-5, rtol=1e-5), float(
        jnp.max(jnp.abs(out - ref)))

    print("KERNEL_OK")
</pallas_src>

<mosaic_0001>
module attributes {stable_mosaic.version = 11 : i64} {
  func.func @classifier_kernel(%arg0: i32, %arg1: i32, %arg2: memref<3x2x32xf32, #tpu.memory_space<vmem>>, %arg3: memref<32x32xf32, #tpu.memory_space<vmem>>, %arg4: memref<1x32xf32, #tpu.memory_space<vmem>>, %arg5: memref<32x128xf32, #tpu.memory_space<vmem>>, %arg6: memref<1x128xf32, #tpu.memory_space<vmem>>, %arg7: memref<2x128xf32, #tpu.memory_space<vmem>>, %arg8: memref<2x32xf32, #tpu.memory_space<vmem>>) attributes {dimension_semantics = [#tpu.dimension_semantics<parallel>, #tpu.dimension_semantics<arbitrary>], iteration_bounds = array<i64: 1, 3>, scalar_prefetch = 0 : i64, scratch_operands = 1 : i64, tpu.core_type = #tpu.core_type<tc>, window_params = [{transform_indices = @transform_0, window_bounds = array<i64: 3, 2, 32>}, {pipeline_mode = #tpu.pipeline_mode<synchronous>, transform_indices = @transform_1, window_bounds = array<i64: 32, 32>}, {pipeline_mode = #tpu.pipeline_mode<synchronous>, transform_indices = @transform_2, window_bounds = array<i64: 1, 32>}, {pipeline_mode = #tpu.pipeline_mode<synchronous>, transform_indices = @transform_3, window_bounds = array<i64: 32, 128>}, {pipeline_mode = #tpu.pipeline_mode<synchronous>, transform_indices = @transform_4, window_bounds = array<i64: 1, 128>}, {transform_indices = @transform_5, window_bounds = array<i64: 2, 128>}]} {
    %c0_i32 = arith.constant 0 : i32
    %0 = arith.cmpi eq, %arg1, %c0_i32 : i32
    %1 = arith.extui %0 : i1 to i32
    %c0_i32_0 = arith.constant 0 : i32
    %2 = arith.cmpi ne, %1, %c0_i32_0 : i32
    scf.if %2 {
      %cst_9 = arith.constant 0.000000e+00 : f32
      %18 = vector.broadcast %cst_9 : f32 to vector<2x32xf32>
      %c0_10 = arith.constant 0 : index
      %c0_11 = arith.constant 0 : index
      %19 = vector.load %arg8[%c0_10, %c0_11] : memref<2x32xf32, #tpu.memory_space<vmem>>, vector<2x32xf32>
      tpu.vector_store %arg8[%c0_10, %c0_11], %18 {strides = array<i32>} : memref<2x32xf32, #tpu.memory_space<vmem>>, vector<2x32xf32>,
    } else {
    }
    %c0 = arith.constant 0 : index
    %c0_1 = arith.constant 0 : index
    %c0_2 = arith.constant 0 : index
    %3 = vector.load %arg2[%c0, %c0_1, %c0_2] : memref<3x2x32xf32, #tpu.memory_space<vmem>>, vector<3x2x32xf32>
    %c3_i32 = arith.constant 3 : i32
    %4 = arith.muli %arg1, %c3_i32 : i32
    %c8_i32 = arith.constant 8 : i32
    %5 = arith.subi %c8_i32, %4 : i32
    %6 = tpu.iota {dimensions = array<i32: 0>} : vector<3x2x32xi32>
    %7 = vector.broadcast %5 : i32 to vector<3x2x32xi32>
    %8 = arith.cmpi slt, %6, %7 : vector<3x2x32xi32>
    %cst = arith.constant 0.000000e+00 : f32
    %9 = vector.broadcast %cst : f32 to vector<3x2x32xf32>
    %10 = arith.select %8, %3, %9 : vector<3x2x32xi1>, vector<3x2x32xf32>
    %c0_3 = arith.constant 0 : index
    %c0_4 = arith.constant 0 : index
    %11 = vector.load %arg8[%c0_3, %c0_4] : memref<2x32xf32, #tpu.memory_space<vmem>>, vector<2x32xf32>
    %cst_5 = arith.constant dense<0.000000e+00> : vector<2x32xf32>
    %12 = vector.multi_reduction <add>, %10, %cst_5 [0] : vector<3x2x32xf32> to vector<2x32xf32>
    %13 = arith.addf %11, %12 : vector<2x32xf32>
    %c0_6 = arith.constant 0 : index
    %c0_7 = arith.constant 0 : index
    %14 = vector.load %arg8[%c0_6, %c0_7] : memref<2x32xf32, #tpu.memory_space<vmem>>, vector<2x32xf32>
    tpu.vector_store %arg8[%c0_6, %c0_7], %13 {strides = array<i32>} : memref<2x32xf32, #tpu.memory_space<vmem>>, vector<2x32xf32>,
    %c2_i32 = arith.constant 2 : i32
    %15 = arith.cmpi eq, %arg1, %c2_i32 : i32
    %16 = arith.extui %15 : i1 to i32
    %c0_i32_8 = arith.constant 0 : i32
    %17 = arith.cmpi ne, %16, %c0_i32_8 : i32
    scf.if %17 {
      %c0_9 = arith.constant 0 : index
      %c0_10 = arith.constant 0 : index
      %18 = vector.load %arg8[%c0_9, %c0_10] : memref<2x32xf32, #tpu.memory_space<vmem>>, vector<2x32xf32>
      %cst_11 = arith.constant 1.250000e-01 : f32
      %19 = vector.broadcast %cst_11 : f32 to vector<2x32xf32>
      %20 = arith.mulf %18, %19 : vector<2x32xf32>
      %c0_12 = arith.constant 0 : index
      %c0_13 = arith.constant 0 : index
      %21 = vector.load %arg3[%c0_12, %c0_13] : memref<32x32xf32, #tpu.memory_space<vmem>>, vector<32x32xf32>
      %cst_14 = arith.constant dense<0.000000e+00> : vector<2x32xf32>
      %22 = tpu.matmul %20, %21, %cst_14 {dimension_numbers = #tpu.dot_dimension_numbers<[1], [0], [0], [1], [0, 0, 1, 1], [], []>} : vector<2x32xf32>, vector<32x32xf32>, vector<2x32xf32> -> vector<2x32xf32>
      %c0_15 = arith.constant 0 : index
      %c0_16 = arith.constant 0 : index
      %23 = vector.load %arg4[%c0_15, %c0_16] : memref<1x32xf32, #tpu.memory_space<vmem>>, vector<1x32xf32>
      %24 = vector.broadcast %23 : vector<1x32xf32> to vector<2x32xf32>
      %25 = arith.addf %22, %24 : vector<2x32xf32>
      %c0_17 = arith.constant 0 : index
      %c0_18 = arith.constant 0 : index
      %26 = vector.load %arg5[%c0_17, %c0_18] : memref<32x128xf32, #tpu.memory_space<vmem>>, vector<32x128xf32>
      %cst_19 = arith.constant dense<0.000000e+00> : vector<2x128xf32>
      %27 = tpu.matmul %25, %26, %cst_19 {dimension_numbers = #tpu.dot_dimension_numbers<[1], [0], [0], [1], [0, 0, 1, 1], [], []>} : vector<2x32xf32>, vector<32x128xf32>, vector<2x128xf32> -> vector<2x128xf32>
      %c0_20 = arith.constant 0 : index
      %c0_21 = arith.constant 0 : index
      %28 = vector.load %arg6[%c0_20, %c0_21] : memref<1x128xf32, #tpu.memory_space<vmem>>, vector<1x128xf32>
      %29 = vector.broadcast %28 : vector<1x128xf32> to vector<2x128xf32>
      %30 = arith.addf %27, %29 : vector<2x128xf32>
      %c0_22 = arith.constant 0 : index
      %c0_23 = arith.constant 0 : index
      %31 = vector.load %arg7[%c0_22, %c0_23] : memref<2x128xf32, #tpu.memory_space<vmem>>, vector<2x128xf32>
      tpu.vector_store %arg7[%c0_22, %c0_23], %30 {strides = array<i32>} : memref<2x128xf32, #tpu.memory_space<vmem>>, vector<2x128xf32>,
    } else {
    }
    return
  }
  func.func @transform_0(%arg0: i32, %arg1: i32) -> (i32, i32, i32) {
    %c0_i32 = arith.constant 0 : i32
    %c0_i32_0 = arith.constant 0 : i32
    return %arg1, %arg0, %c0_i32 : i32, i32, i32
  }
  func.func @transform_1(%arg0: i32, %arg1: i32) -> (i32, i32) {
    %c0_i32 = arith.constant 0 : i32
    %c0_i32_0 = arith.constant 0 : i32
    %c0_i32_1 = arith.constant 0 : i32
    return %c0_i32, %c0_i32_0 : i32, i32
  }
  func.func @transform_2(%arg0: i32, %arg1: i32) -> (i32, i32) {
    %c0_i32 = arith.constant 0 : i32
    %c0_i32_0 = arith.constant 0 : i32
    %c0_i32_1 = arith.constant 0 : i32
    return %c0_i32, %c0_i32_0 : i32, i32
  }
  func.func @transform_3(%arg0: i32, %arg1: i32) -> (i32, i32) {
    %c0_i32 = arith.constant 0 : i32
    %c0_i32_0 = arith.constant 0 : i32
    %c0_i32_1 = arith.constant 0 : i32
    return %c0_i32, %c0_i32_0 : i32, i32
  }
  func.func @transform_4(%arg0: i32, %arg1: i32) -> (i32, i32) {
    %c0_i32 = arith.constant 0 : i32
    %c0_i32_0 = arith.constant 0 : i32
    %c0_i32_1 = arith.constant 0 : i32
    return %c0_i32, %c0_i32_0 : i32, i32
  }
  func.func @transform_5(%arg0: i32, %arg1: i32) -> (i32, i32) {
    %c0_i32 = arith.constant 0 : i32
    %c0_i32_0 = arith.constant 0 : i32
    return %arg0, %c0_i32 : i32, i32
  }
}

</mosaic_0001>

<bundles_post_ra>
// kernel: classifier_forward.1
= control target key start
LH: loop header
LB: loop body
LE: loop exit
PB: predicated region body
PF: predicated region fallthrough
CT: control target
= control target key end

     0   :  { %10 = vsyncpa [#allocation4], 0  ;;  %s557_s18 = smov 0   ;;  %s559_s19 = smov 0   ;;  %s628_s0 = inlined_call_operand.vmem [shape: f32[8,2,32], index: 0, kind: input, shape index: {}]   ;;  %s629_s1 = inlined_call_operand.vmem [shape: f32[32,32], index: 1, kind: input, shape index: {}]   ;;  %s630_s2 = inlined_call_operand.vmem [shape: f32[1,32], index: 2, kind: input, shape index: {}]   ;;  %s631_s3 = inlined_call_operand.vmem [shape: f32[32,128], index: 3, kind: input, shape index: {}]   ;;  %s632_s4 = inlined_call_operand.vmem [shape: f32[1,128], index: 4, kind: input, shape index: {}]   ;;  %s633_s5 = inlined_call_operand.hbm [shape: f32[2,128], index: 5, kind: output, shape index: {}]  }
   0x1   :  { %s561_s20 = smov 0  }
   0x2 LB: > { %s422_s21 = sadd.s32 4294967295, %s523_s20   ;;  %s25_s22 = sadd.s32 1, %s519_s19  ;;  %s523_s20 = sphi %s561_s20, %s16_s20   ;;  %s519_s19 = sphi %s559_s19, %s635_s19   ;;  %s515_s18 = sphi %s557_s18, %s634_s18  }
   0x3   : > { %p26_p0 = scmp.ge.s32.totalorder %s25_s22, 3  ;;  %p425_p1 = scmp.ge.s32.totalorder %s523_s20, 1 }
   0x4   : > { %p214_p2 = scmp.lt.s32.totalorder %s523_s20, 4 }
   0x5   : > { %s637_s22 = smov (%p26_p0, %s25_s22), 0 }
   0x6   : > { %p215_p3 = pnand %p425_p1, %p214_p2 }
   0x7   : > { %s244_s23 = smul.u32 (!%p215_p3), 3, %s515_s18  ;;  %p427_p5 = scmp.ne.s32.totalorder (!%p215_p3), %s515_s18, 0 }
   0x8   : > { %218 = sbr.rel (%p215_p3) target bundleno = 306 (0x132), region = 40 }
   0x9   : > { %p249_p4 = scmp.lt.s32.totalorder (!%p215_p3), %s244_s23, 7 }
   0xd   : > { %s250_s24 = scalar_select %p249_p4, %s244_s23, 7 }
   0xe   : > { %264 = sbr.rel (%p427_p5) target bundleno = 21 (0x15), region = 44 }
   0xf   : > { %s426_s25 = sshll.u32 %s250_s24, 1 }
  0x10   : > { %s255_s28 = scalar_lea.vmem %s628_s0, %s426_s25 }
  0x13   : > { %vm265_vm0 = vcmask 254976   ;;  %v525_v0 = vmov 0.0  }
  0x14   : > { %266 = vst.msk [vmem:[#allocation2] sm:$0x3] %vm265_vm0, %v525_v0 }
  0x15 PF: > { %v267_v1 = vld [vmem:[%s255_s28] sm:$0x3]  ;;  %v268_v2 = vld [vmem:[%s255_s28 + $0x2] sm:$0x3]  ;;  %v269_v3 = vld [vmem:[%s255_s28 + $0x4] sm:$0x3] }
  0x16   : > { %s271_s29 = ssub.s32 8, %s244_s23  ;;  %vm280_vm1 = vcmask 254976   ;;  %p428_p6 = scmp.ne.s32.totalorder %s515_s18, 2 }
  0x17   : > { %v272_v4 = vstv %s271_s29 }
  0x18   : > { %vm273_vm2 = vcmp.gt.s32.totalorder %v272_v4, 0  ;;  %vm274_vm3 = vcmp.gt.s32.totalorder %v272_v4, 1  ;;  %vm275_vm4 = vcmp.gt.s32.totalorder %v272_v4, 2 }
  0x19   : > { %v276_v5 = vsel %vm273_vm2, %v267_v1, 0.0  ;;  %v277_v6 = vsel %vm274_vm3, %v268_v2, 0.0  ;;  %v278_v7 = vsel %vm275_vm4, %v269_v3, 0.0 }
  0x1a   : > { %v281_v8 = vsel %vm280_vm1, %v276_v5, 0.0  ;;  %v282_v9 = vsel %vm280_vm1, %v277_v6, 0.0  ;;  %v284_v10 = vsel %vm280_vm1, %v278_v7, 0.0 }
  0x1b   : > { %v283_v11 = vadd.f32 %v282_v9, %v281_v8  ;;  %v279_v12 = vld [vmem:[#allocation2] sm:$0x3] }
  0x1d   : > { %v285_v13 = vadd.f32 %v284_v10, %v283_v11  ;;  %291 = sbr.rel (%p428_p6) target bundleno = 300 (0x12c), region = 48 }
  0x1f   : > { %v286_v14 = vadd.f32 %v285_v13, %v279_v12 }
  0x21   : > { %287 = vst.msk [vmem:[#allocation2] sm:$0x3] %vm280_vm1, %v286_v14 }
  0x22   : > { %v297_v15 = vld [vmem:[%s629_s1 + $0x18] sm:$0xff]  ;;  %v296_v16 = vld [vmem:[%s629_s1 + $0x10] sm:$0xff]  ;;  %v295_v19 = vld [vmem:[%s629_s1 + $0x8] sm:$0xff]  ;;  %vm302_vm5 = vcmask 261120  }
  0x23   : > { %318 = vmatpush.msra.mxu0 %v297_v15  ;;  %v329_v18 = vld [vmem:[%s631_s3 + $0x18] sm:$0xff]  ;;  %v328_v20 = vld [vmem:[%s631_s3 + $0x10] sm:$0xff]  ;;  %v294_v21 = vld [vmem:[%s629_s1] sm:$0xff] }
  0x24   : > { %349 = vmatpush.msra.mxu1 %v329_v18  ;;  %v327_v23 = vld [vmem:[%s631_s3 + $0x8] sm:$0xff]  ;;  %v326_v24 = vld [vmem:[%s631_s3] sm:$0xff] }
  0x25   : > { %319 = vmatpush.msra.mxu0 %v296_v16  ;;  %v467_v25 = vld [vmem:[%s630_s2] ss:$0 sm:$0xff] }
  0x26   : > { %350 = vmatpush.msra.mxu1 %v328_v20  ;;  %v468_v28 = vld [vmem:[%s632_s4] ss:$0 sm:$0xff] }
  0x27   : > { %320 = vmatpush.msra.mxu0 %v295_v19 }
  0x28   : > { %v292_v17 = vld [vmem:[#allocation2] sm:$0x3]  ;;  %351 = vmatpush.msra.mxu1 %v327_v23 }
  0x29   : > { %v293_v22 = vmul.f32 0.125, %v292_v17  ;;  %321 = vmatpush.msra.mxu0 %v294_v21 }
  0x2a   : > { %352 = vmatpush.msra.mxu1 %v326_v24 }
  0x2b   : > { %429 = vmatmul.msk.f32.vlgmr.msra.gmra.mxu0 %vm302_vm5, %v293_v22 }
  0xa8   : > { %v323_v26 = vpop.f32.mrf.mxu0 }
  0xa9   : > { %v324_v27 = vadd.f32 %v467_v25, %v323_v26 }
  0xab   : > { %430 = vmatmul.msk.f32.vlgmr.msra.gmra.mxu1 %vm302_vm5, %v324_v27 }
 0x128   : > { %v354_v29 = vpop.f32.mrf.mxu1 }
 0x129   : > { %v355_v30 = vadd.f32 %v468_v28, %v354_v29 }
 0x12b   : > { %357 = vst [vmem:[#allocation3] sm:$0x3] %v355_v30 }
 0x12c PF: > { %p439_p7 = scmp.eq.s32.totalorder %s422_s21, 2  ;;  %s368_s6 = sshll.u32 %s633_s5, 4  ;;  %s369_s6 = int_to_ptr.hbm [resolvable:$true] %s368_s6 }
 0x12d   : > { %s526_s7 = smov [#allocation3]  }
 0x12e   : > { %s366_s8 = sshll.u32 %s526_s7, 4  ;;  %s367_s8 = int_to_ptr.vmem [resolvable:$true] %s366_s8 }
 0x12f   : > { %436 = dma.vmem_to_hbm [thread:$0]  (%p439_p7), %s367_s8, 32, %s369_s6, [#allocation4]  }
 0x130   : > { %510 = dma.done.wait (%p439_p7), [#allocation4], 32  }
 0x131   : > { %512 = vsyncadd (%p439_p7), [#allocation4], 4294967264 }
 0x132 PF: > { %s16_s20 = sadd.s32 1, %s523_s20   ;;  %s634_s18 = smov %s519_s19 }
 0x133   : > { %p13_p8 = scmp.ge.s32.totalorder %s16_s20, 5   ;;  %s635_s19 = smov %s637_s22 }
 0x135   :  { %15 = sbr.rel (!%p13_p8) target bundleno = 2 (0x2), region = 76 }
 0x13a   :  { %382 = vsyncpa [#allocation4], 1 }
 0x13b   :  { %384 = vsyncpa [#allocation4 + $0x1], 1 }

</bundles_post_ra>
